<compile_context>
chip_gen: v7x
topology: tpu7x:2x2x1
jax: 0.10.0
libtpu: 0.0.40
codegen_flags: <defaults>
</compile_context>

<pallas_src>
import functools

import jax
import jax.numpy as jnp
from jax.experimental import pallas as pl
from jax.experimental.pallas import tpu as pltpu


def _eblock_kernel(x_ref, w_ref, b_ref, o_ref, *, H, WCp, num_res):
    """Fused EBlock for one lane-packed group of batch elements.

    x_ref : (1, H, WCp)              activations, lanes = [batch-in-group, w, c]
    w_ref : (2*num_res, WCp, 3*WCp)  fused banded weights [ky=0 | ky=1 | ky=2]
    b_ref : (2*num_res, WCp)         bias tiled over (batch-in-group, w)
    o_ref : (1, H, WCp)
    """
    f32 = jnp.float32

    # (H, H) single-row shift matrices, built once per grid step (hoisted out
    # of all conv loops).  They replace the old xpad scratch:
    #   s_dn @ p -> row y becomes p[y-1]  (row 0    zeroed)  "use the row above"
    #   s_up @ p -> row y becomes p[y+1]  (row H-1  zeroed)  "use the row below"
    row = jax.lax.broadcasted_iota(jnp.int32, (H, H), 0)
    col = jax.lax.broadcasted_iota(jnp.int32, (H, H), 1)
    s_dn = (row == col + 1).astype(f32)
    s_up = (row + 1 == col).astype(f32)

    x = x_ref[0].astype(f32)                                   # (H, WCp)

    for r in range(num_res):                                   # static unroll: ResBlocks
        skip = x
        h = x
        for c in range(2):                                     # conv1 (+ReLU), conv2
            li = 2 * r + c
            # One wide MXU matmul per conv: all three ky taps at once.
            y = jnp.dot(h, w_ref[li], preferred_element_type=f32)   # (H, 3*WCp)
            p0 = y[:, 0 * WCp:1 * WCp]   # ky=0 tap: output row y needs input row y-1
            p1 = y[:, 1 * WCp:2 * WCp]   # ky=1 tap: same row
            p2 = y[:, 2 * WCp:3 * WCp]   # ky=2 tap: output row y needs input row y+1
            acc = (p1
                   + jnp.dot(s_dn, p0, preferred_element_type=f32)
                   + jnp.dot(s_up, p2, preferred_element_type=f32)
                   + b_ref[li:li + 1, :])
            h = jnp.maximum(acc, 0.0) if c == 0 else acc
        x = skip + h                                            # residual add in registers

    o_ref[0] = x.astype(o_ref.dtype)


def _fused_band_matrix(w, W, NB):
    """(3, 3, Cin, Cout) HWIO conv weights -> (NB*W*Cin, 3*NB*W*Cout).

    For each kernel row ky, M_ky[xi*Cin + ci, x*Cout + co] = w[ky, kx, ci, co]
    with xi = x + kx - 1, i.e. horizontal "same" padding and the channel
    contraction are folded into one banded matmul.  The NB lane-packed batch
    elements get a block-diagonal copy, and the three ky matrices are
    concatenated on the output axis so the kernel issues a single wide dot
    per conv.
    """
    mats = []
    for ky in range(3):
        m = jnp.zeros((W * w.shape[2], W * w.shape[3]), w.dtype)
        for kx in range(3):
            m = m + jnp.kron(jnp.eye(W, k=1 - kx, dtype=w.dtype), w[ky, kx])
        if NB > 1:
            m = jnp.kron(jnp.eye(NB, dtype=w.dtype), m)
        mats.append(m)
    return jnp.concatenate(mats, axis=1)


def _pick_lane_pack(N, WC):
    """Batch elements packed per grid step: fill the 128-lane axis, but keep
    >= 2 grid steps when N >= 2 so both v7x TensorCores get work."""
    nb = max(1, 128 // WC)
    while nb > 1 and (N % nb != 0 or N // nb < 2):
        nb -= 1
    return nb


def make_eblock_forward(params, x_shape, out_dtype=jnp.float32):
    """Build a jitted EBlock forward for a fixed input shape.

    All weight preparation (banded matrices, bias tiling, lane packing) runs
    once here, eagerly — not inside the per-call jit.
    """
    N, C, H, W = x_shape
    num_res = len(params)
    WC = W * C
    NB = _pick_lane_pack(N, WC)
    WCp = NB * WC
    G = N // NB
    L = 2 * num_res

    # TODO(synk): weights kept f32; bf16 would halve MXU passes but is marginal
    # against the 2e-3 reference tolerance at this depth.
    w_cat = jnp.stack([_fused_band_matrix(w, W, NB)
                       for (w1, _, w2, _) in params for w in (w1, w2)])   # (L, WCp, 3*WCp)
    b_cat = jnp.stack([jnp.tile(b, NB * W)
                       for (_, b1, _, b2) in params for b in (b1, b2)])   # (L, WCp)

    # Effective conv FLOPs (not the structural zeros of the banded matrices)
    # and the bytes actually moved (activations both ways + weight slab).
    flops = L * N * H * W * (2 * 9 * C * C)
    bytes_accessed = 4 * (2 * N * H * WC) + 4 * int(w_cat.size + b_cat.size)

    kernel = functools.partial(_eblock_kernel, H=H, WCp=WCp, num_res=num_res)

    eblock = pl.pallas_call(
        kernel,
        out_shape=jax.ShapeDtypeStruct((G, H, WCp), out_dtype),
        grid=(G,),
        in_specs=[
            pl.BlockSpec((1, H, WCp), lambda n: (n, 0, 0)),
            pl.BlockSpec((L, WCp, 3 * WCp), lambda n: (0, 0, 0)),
            pl.BlockSpec((L, WCp), lambda n: (0, 0)),
        ],
        out_specs=pl.BlockSpec((1, H, WCp), lambda n: (n, 0, 0)),
        compiler_params=pltpu.CompilerParams(
            dimension_semantics=("parallel",),
            vmem_limit_bytes=32 * 1024 * 1024,
        ),
        cost_estimate=pl.CostEstimate(
            flops=flops, transcendentals=0, bytes_accessed=bytes_accessed),
    )

    @jax.jit
    def forward(x_nchw):
        # NCHW -> (G, H, NB*W*C): channels minor, W middle, packed batch
        # outermost on the lane axis -> lane-dense kernel loads/stores.
        xt = jnp.transpose(x_nchw, (0, 2, 3, 1)).reshape(G, NB, H, WC)
        xt = jnp.transpose(xt, (0, 2, 1, 3)).reshape(G, H, WCp)
        out = eblock(xt, w_cat, b_cat)
        out = out.reshape(G, H, NB, W, C)
        return jnp.transpose(out, (0, 2, 4, 1, 3)).reshape(N, C, H, W)

    return forward


def init_eblock_params(key, channel, num_res):
    """Deterministic init: num_res ResBlocks, each with two 3x3 convs (HWIO)."""
    params = []
    scale = 1.0 / jnp.sqrt(9.0 * channel)
    for _ in range(num_res):
        key, k1, k2, k3, k4 = jax.random.split(key, 5)
        w1 = jax.random.normal(k1, (3, 3, channel, channel), jnp.float32) * scale
        b1 = jax.random.normal(k2, (channel,), jnp.float32) * 0.1
        w2 = jax.random.normal(k3, (3, 3, channel, channel), jnp.float32) * scale
        b2 = jax.random.normal(k4, (channel,), jnp.float32) * 0.1
        params.append((w1, b1, w2, b2))
    return params


def _reference_eblock(x_nchw, params):
    """Pure-JAX reference (lax conv) for correctness checking."""
    x = jnp.transpose(x_nchw, (0, 2, 3, 1))
    dn = jax.lax.conv_dimension_numbers(
        x.shape, (3, 3, x.shape[-1], x.shape[-1]), ("NHWC", "HWIO", "NHWC"))
    for (w1, b1, w2, b2) in params:
        h = jax.lax.conv_general_dilated(
            x, w1, (1, 1), "SAME", dimension_numbers=dn,
            precision=jax.lax.Precision.HIGHEST) + b1
        h = jnp.maximum(h, 0.0)
        h = jax.lax.conv_general_dilated(
            h, w2, (1, 1), "SAME", dimension_numbers=dn,
            precision=jax.lax.Precision.HIGHEST) + b2
        x = x + h
    return jnp.transpose(x, (0, 3, 1, 2))


if __name__ == "__main__":
    key = jax.random.PRNGKey(0)
    kx, kp = jax.random.split(key)

    batch, channel, spatial = 2, 4, 16
    num_res = 3
    mode = "train"  # unused (see TODO at top of file)

    x = jax.random.normal(kx, (batch, channel, spatial, spatial), jnp.float32)
    params = init_eblock_params(kp, channel, num_res)

    forward = make_eblock_forward(params, x.shape)
    out = jax.block_until_ready(forward(x))

    ref = _reference_eblock(x, params)
    assert out.shape == x.shape
    assert jnp.allclose(out, ref, atol=2e-3, rtol=2e-3), "mismatch vs. reference conv"

    print("KERNEL_OK")
</pallas_src>

<mosaic_0001>
module attributes {stable_mosaic.version = 11 : i64} {
  func.func @_eblock_kernel(%arg0: i32, %arg1: memref<1x16x64xf32, #tpu.memory_space<vmem>>, %arg2: memref<6x64x192xf32, #tpu.memory_space<vmem>>, %arg3: memref<6x64xf32, #tpu.memory_space<vmem>>, %arg4: memref<1x16x64xf32, #tpu.memory_space<vmem>>) attributes {dimension_semantics = [#tpu.dimension_semantics<parallel>], iteration_bounds = array<i64: 2>, scalar_prefetch = 0 : i64, scratch_operands = 0 : i64, tpu.core_type = #tpu.core_type<tc>, window_params = [{transform_indices = @transform_0, window_bounds = array<i64: 1, 16, 64>}, {pipeline_mode = #tpu.pipeline_mode<synchronous>, transform_indices = @transform_1, window_bounds = array<i64: 6, 64, 192>}, {pipeline_mode = #tpu.pipeline_mode<synchronous>, transform_indices = @transform_2, window_bounds = array<i64: 6, 64>}, {transform_indices = @transform_3, window_bounds = array<i64: 1, 16, 64>}]} {
    %0 = tpu.iota {dimensions = array<i32: 0>} : vector<16x16xi32>
    %1 = tpu.iota {dimensions = array<i32: 1>} : vector<16x16xi32>
    %c1_i32 = arith.constant 1 : i32
    %2 = vector.broadcast %c1_i32 : i32 to vector<16x16xi32>
    %3 = arith.addi %1, %2 : vector<16x16xi32>
    %4 = arith.cmpi eq, %0, %3 : vector<16x16xi32>
    %5 = arith.extui %4 : vector<16x16xi1> to vector<16x16xi32>
    %6 = arith.sitofp %5 : vector<16x16xi32> to vector<16x16xf32>
    %c1_i32_0 = arith.constant 1 : i32
    %7 = vector.broadcast %c1_i32_0 : i32 to vector<16x16xi32>
    %8 = arith.addi %0, %7 : vector<16x16xi32>
    %9 = arith.cmpi eq, %8, %1 : vector<16x16xi32>
    %10 = arith.extui %9 : vector<16x16xi1> to vector<16x16xi32>
    %11 = arith.sitofp %10 : vector<16x16xi32> to vector<16x16xf32>
    %c0 = arith.constant 0 : index
    %c0_1 = arith.constant 0 : index
    %c0_2 = arith.constant 0 : index
    %12 = vector.load %arg1[%c0, %c0_1, %c0_2] : memref<1x16x64xf32, #tpu.memory_space<vmem>>, vector<1x16x64xf32>
    %13 = vector.shape_cast %12 : vector<1x16x64xf32> to vector<16x64xf32>
    %c0_3 = arith.constant 0 : index
    %c0_4 = arith.constant 0 : index
    %c0_5 = arith.constant 0 : index
    %14 = vector.load %arg2[%c0_3, %c0_4, %c0_5] : memref<6x64x192xf32, #tpu.memory_space<vmem>>, vector<1x64x192xf32>
    %15 = vector.shape_cast %14 : vector<1x64x192xf32> to vector<64x192xf32>
    %cst = arith.constant dense<0.000000e+00> : vector<16x192xf32>
    %16 = tpu.matmul %13, %15, %cst {dimension_numbers = #tpu.dot_dimension_numbers<[1], [0], [0], [1], [0, 0, 1, 1], [], []>} : vector<16x64xf32>, vector<64x192xf32>, vector<16x192xf32> -> vector<16x192xf32>
    %17 = vector.extract_strided_slice %16 {offsets = [0, 0], sizes = [16, 64], strides = [1, 1]} : vector<16x192xf32> to vector<16x64xf32>
    %18 = vector.extract_strided_slice %16 {offsets = [0, 64], sizes = [16, 64], strides = [1, 1]} : vector<16x192xf32> to vector<16x64xf32>
    %19 = vector.extract_strided_slice %16 {offsets = [0, 128], sizes = [16, 64], strides = [1, 1]} : vector<16x192xf32> to vector<16x64xf32>
    %cst_6 = arith.constant dense<0.000000e+00> : vector<16x64xf32>
    %20 = tpu.matmul %6, %17, %cst_6 {dimension_numbers = #tpu.dot_dimension_numbers<[1], [0], [0], [1], [0, 0, 1, 1], [], []>} : vector<16x16xf32>, vector<16x64xf32>, vector<16x64xf32> -> vector<16x64xf32>
    %21 = arith.addf %18, %20 : vector<16x64xf32>
    %cst_7 = arith.constant dense<0.000000e+00> : vector<16x64xf32>
    %22 = tpu.matmul %11, %19, %cst_7 {dimension_numbers = #tpu.dot_dimension_numbers<[1], [0], [0], [1], [0, 0, 1, 1], [], []>} : vector<16x16xf32>, vector<16x64xf32>, vector<16x64xf32> -> vector<16x64xf32>
    %23 = arith.addf %21, %22 : vector<16x64xf32>
    %c0_8 = arith.constant 0 : index
    %c0_9 = arith.constant 0 : index
    %24 = vector.load %arg3[%c0_8, %c0_9] : memref<6x64xf32, #tpu.memory_space<vmem>>, vector<1x64xf32>
    %25 = vector.broadcast %24 : vector<1x64xf32> to vector<16x64xf32>
    %26 = arith.addf %23, %25 : vector<16x64xf32>
    %cst_10 = arith.constant 0.000000e+00 : f32
    %27 = vector.broadcast %cst_10 : f32 to vector<16x64xf32>
    %28 = arith.maximumf %26, %27 : vector<16x64xf32>
    %c1 = arith.constant 1 : index
    %c0_11 = arith.constant 0 : index
    %c0_12 = arith.constant 0 : index
    %29 = vector.load %arg2[%c1, %c0_11, %c0_12] : memref<6x64x192xf32, #tpu.memory_space<vmem>>, vector<1x64x192xf32>
    %30 = vector.shape_cast %29 : vector<1x64x192xf32> to vector<64x192xf32>
    %cst_13 = arith.constant dense<0.000000e+00> : vector<16x192xf32>
    %31 = tpu.matmul %28, %30, %cst_13 {dimension_numbers = #tpu.dot_dimension_numbers<[1], [0], [0], [1], [0, 0, 1, 1], [], []>} : vector<16x64xf32>, vector<64x192xf32>, vector<16x192xf32> -> vector<16x192xf32>
    %32 = vector.extract_strided_slice %31 {offsets = [0, 0], sizes = [16, 64], strides = [1, 1]} : vector<16x192xf32> to vector<16x64xf32>
    %33 = vector.extract_strided_slice %31 {offsets = [0, 64], sizes = [16, 64], strides = [1, 1]} : vector<16x192xf32> to vector<16x64xf32>
    %34 = vector.extract_strided_slice %31 {offsets = [0, 128], sizes = [16, 64], strides = [1, 1]} : vector<16x192xf32> to vector<16x64xf32>
    %cst_14 = arith.constant dense<0.000000e+00> : vector<16x64xf32>
    %35 = tpu.matmul %6, %32, %cst_14 {dimension_numbers = #tpu.dot_dimension_numbers<[1], [0], [0], [1], [0, 0, 1, 1], [], []>} : vector<16x16xf32>, vector<16x64xf32>, vector<16x64xf32> -> vector<16x64xf32>
    %36 = arith.addf %33, %35 : vector<16x64xf32>
    %cst_15 = arith.constant dense<0.000000e+00> : vector<16x64xf32>
    %37 = tpu.matmul %11, %34, %cst_15 {dimension_numbers = #tpu.dot_dimension_numbers<[1], [0], [0], [1], [0, 0, 1, 1], [], []>} : vector<16x16xf32>, vector<16x64xf32>, vector<16x64xf32> -> vector<16x64xf32>
    %38 = arith.addf %36, %37 : vector<16x64xf32>
    %c1_16 = arith.constant 1 : index
    %c0_17 = arith.constant 0 : index
    %39 = vector.load %arg3[%c1_16, %c0_17] : memref<6x64xf32, #tpu.memory_space<vmem>>, vector<1x64xf32>
    %40 = vector.broadcast %39 : vector<1x64xf32> to vector<16x64xf32>
    %41 = arith.addf %38, %40 : vector<16x64xf32>
    %42 = arith.addf %13, %41 : vector<16x64xf32>
    %c2 = arith.constant 2 : index
    %c0_18 = arith.constant 0 : index
    %c0_19 = arith.constant 0 : index
    %43 = vector.load %arg2[%c2, %c0_18, %c0_19] : memref<6x64x192xf32, #tpu.memory_space<vmem>>, vector<1x64x192xf32>
    %44 = vector.shape_cast %43 : vector<1x64x192xf32> to vector<64x192xf32>
    %cst_20 = arith.constant dense<0.000000e+00> : vector<16x192xf32>
    %45 = tpu.matmul %42, %44, %cst_20 {dimension_numbers = #tpu.dot_dimension_numbers<[1], [0], [0], [1], [0, 0, 1, 1], [], []>} : vector<16x64xf32>, vector<64x192xf32>, vector<16x192xf32> -> vector<16x192xf32>
    %46 = vector.extract_strided_slice %45 {offsets = [0, 0], sizes = [16, 64], strides = [1, 1]} : vector<16x192xf32> to vector<16x64xf32>
    %47 = vector.extract_strided_slice %45 {offsets = [0, 64], sizes = [16, 64], strides = [1, 1]} : vector<16x192xf32> to vector<16x64xf32>
    %48 = vector.extract_strided_slice %45 {offsets = [0, 128], sizes = [16, 64], strides = [1, 1]} : vector<16x192xf32> to vector<16x64xf32>
    %cst_21 = arith.constant dense<0.000000e+00> : vector<16x64xf32>
    %49 = tpu.matmul %6, %46, %cst_21 {dimension_numbers = #tpu.dot_dimension_numbers<[1], [0], [0], [1], [0, 0, 1, 1], [], []>} : vector<16x16xf32>, vector<16x64xf32>, vector<16x64xf32> -> vector<16x64xf32>
    %50 = arith.addf %47, %49 : vector<16x64xf32>
    %cst_22 = arith.constant dense<0.000000e+00> : vector<16x64xf32>
    %51 = tpu.matmul %11, %48, %cst_22 {dimension_numbers = #tpu.dot_dimension_numbers<[1], [0], [0], [1], [0, 0, 1, 1], [], []>} : vector<16x16xf32>, vector<16x64xf32>, vector<16x64xf32> -> vector<16x64xf32>
    %52 = arith.addf %50, %51 : vector<16x64xf32>
    %c2_23 = arith.constant 2 : index
    %c0_24 = arith.constant 0 : index
    %53 = vector.load %arg3[%c2_23, %c0_24] : memref<6x64xf32, #tpu.memory_space<vmem>>, vector<1x64xf32>
    %54 = vector.broadcast %53 : vector<1x64xf32> to vector<16x64xf32>
    %55 = arith.addf %52, %54 : vector<16x64xf32>
    %cst_25 = arith.constant 0.000000e+00 : f32
    %56 = vector.broadcast %cst_25 : f32 to vector<16x64xf32>
    %57 = arith.maximumf %55, %56 : vector<16x64xf32>
    %c3 = arith.constant 3 : index
    %c0_26 = arith.constant 0 : index
    %c0_27 = arith.constant 0 : index
    %58 = vector.load %arg2[%c3, %c0_26, %c0_27] : memref<6x64x192xf32, #tpu.memory_space<vmem>>, vector<1x64x192xf32>
    %59 = vector.shape_cast %58 : vector<1x64x192xf32> to vector<64x192xf32>
    %cst_28 = arith.constant dense<0.000000e+00> : vector<16x192xf32>
    %60 = tpu.matmul %57, %59, %cst_28 {dimension_numbers = #tpu.dot_dimension_numbers<[1], [0], [0], [1], [0, 0, 1, 1], [], []>} : vector<16x64xf32>, vector<64x192xf32>, vector<16x192xf32> -> vector<16x192xf32>
    %61 = vector.extract_strided_slice %60 {offsets = [0, 0], sizes = [16, 64], strides = [1, 1]} : vector<16x192xf32> to vector<16x64xf32>
    %62 = vector.extract_strided_slice %60 {offsets = [0, 64], sizes = [16, 64], strides = [1, 1]} : vector<16x192xf32> to vector<16x64xf32>
    %63 = vector.extract_strided_slice %60 {offsets = [0, 128], sizes = [16, 64], strides = [1, 1]} : vector<16x192xf32> to vector<16x64xf32>
    %cst_29 = arith.constant dense<0.000000e+00> : vector<16x64xf32>
    %64 = tpu.matmul %6, %61, %cst_29 {dimension_numbers = #tpu.dot_dimension_numbers<[1], [0], [0], [1], [0, 0, 1, 1], [], []>} : vector<16x16xf32>, vector<16x64xf32>, vector<16x64xf32> -> vector<16x64xf32>
    %65 = arith.addf %62, %64 : vector<16x64xf32>
    %cst_30 = arith.constant dense<0.000000e+00> : vector<16x64xf32>
    %66 = tpu.matmul %11, %63, %cst_30 {dimension_numbers = #tpu.dot_dimension_numbers<[1], [0], [0], [1], [0, 0, 1, 1], [], []>} : vector<16x16xf32>, vector<16x64xf32>, vector<16x64xf32> -> vector<16x64xf32>
    %67 = arith.addf %65, %66 : vector<16x64xf32>
    %c3_31 = arith.constant 3 : index
    %c0_32 = arith.constant 0 : index
    %68 = vector.load %arg3[%c3_31, %c0_32] : memref<6x64xf32, #tpu.memory_space<vmem>>, vector<1x64xf32>
    %69 = vector.broadcast %68 : vector<1x64xf32> to vector<16x64xf32>
    %70 = arith.addf %67, %69 : vector<16x64xf32>
    %71 = arith.addf %42, %70 : vector<16x64xf32>
    %c4 = arith.constant 4 : index
    %c0_33 = arith.constant 0 : index
    %c0_34 = arith.constant 0 : index
    %72 = vector.load %arg2[%c4, %c0_33, %c0_34] : memref<6x64x192xf32, #tpu.memory_space<vmem>>, vector<1x64x192xf32>
    %73 = vector.shape_cast %72 : vector<1x64x192xf32> to vector<64x192xf32>
    %cst_35 = arith.constant dense<0.000000e+00> : vector<16x192xf32>
    %74 = tpu.matmul %71, %73, %cst_35 {dimension_numbers = #tpu.dot_dimension_numbers<[1], [0], [0], [1], [0, 0, 1, 1], [], []>} : vector<16x64xf32>, vector<64x192xf32>, vector<16x192xf32> -> vector<16x192xf32>
    %75 = vector.extract_strided_slice %74 {offsets = [0, 0], sizes = [16, 64], strides = [1, 1]} : vector<16x192xf32> to vector<16x64xf32>
    %76 = vector.extract_strided_slice %74 {offsets = [0, 64], sizes = [16, 64], strides = [1, 1]} : vector<16x192xf32> to vector<16x64xf32>
    %77 = vector.extract_strided_slice %74 {offsets = [0, 128], sizes = [16, 64], strides = [1, 1]} : vector<16x192xf32> to vector<16x64xf32>
    %cst_36 = arith.constant dense<0.000000e+00> : vector<16x64xf32>
    %78 = tpu.matmul %6, %75, %cst_36 {dimension_numbers = #tpu.dot_dimension_numbers<[1], [0], [0], [1], [0, 0, 1, 1], [], []>} : vector<16x16xf32>, vector<16x64xf32>, vector<16x64xf32> -> vector<16x64xf32>
    %79 = arith.addf %76, %78 : vector<16x64xf32>
    %cst_37 = arith.constant dense<0.000000e+00> : vector<16x64xf32>
    %80 = tpu.matmul %11, %77, %cst_37 {dimension_numbers = #tpu.dot_dimension_numbers<[1], [0], [0], [1], [0, 0, 1, 1], [], []>} : vector<16x16xf32>, vector<16x64xf32>, vector<16x64xf32> -> vector<16x64xf32>
    %81 = arith.addf %79, %80 : vector<16x64xf32>
    %c4_38 = arith.constant 4 : index
    %c0_39 = arith.constant 0 : index
    %82 = vector.load %arg3[%c4_38, %c0_39] : memref<6x64xf32, #tpu.memory_space<vmem>>, vector<1x64xf32>
    %83 = vector.broadcast %82 : vector<1x64xf32> to vector<16x64xf32>
    %84 = arith.addf %81, %83 : vector<16x64xf32>
    %cst_40 = arith.constant 0.000000e+00 : f32
    %85 = vector.broadcast %cst_40 : f32 to vector<16x64xf32>
    %86 = arith.maximumf %84, %85 : vector<16x64xf32>
    %c5 = arith.constant 5 : index
    %c0_41 = arith.constant 0 : index
    %c0_42 = arith.constant 0 : index
    %87 = vector.load %arg2[%c5, %c0_41, %c0_42] : memref<6x64x192xf32, #tpu.memory_space<vmem>>, vector<1x64x192xf32>
    %88 = vector.shape_cast %87 : vector<1x64x192xf32> to vector<64x192xf32>
    %cst_43 = arith.constant dense<0.000000e+00> : vector<16x192xf32>
    %89 = tpu.matmul %86, %88, %cst_43 {dimension_numbers = #tpu.dot_dimension_numbers<[1], [0], [0], [1], [0, 0, 1, 1], [], []>} : vector<16x64xf32>, vector<64x192xf32>, vector<16x192xf32> -> vector<16x192xf32>
    %90 = vector.extract_strided_slice %89 {offsets = [0, 0], sizes = [16, 64], strides = [1, 1]} : vector<16x192xf32> to vector<16x64xf32>
    %91 = vector.extract_strided_slice %89 {offsets = [0, 64], sizes = [16, 64], strides = [1, 1]} : vector<16x192xf32> to vector<16x64xf32>
    %92 = vector.extract_strided_slice %89 {offsets = [0, 128], sizes = [16, 64], strides = [1, 1]} : vector<16x192xf32> to vector<16x64xf32>
    %cst_44 = arith.constant dense<0.000000e+00> : vector<16x64xf32>
    %93 = tpu.matmul %6, %90, %cst_44 {dimension_numbers = #tpu.dot_dimension_numbers<[1], [0], [0], [1], [0, 0, 1, 1], [], []>} : vector<16x16xf32>, vector<16x64xf32>, vector<16x64xf32> -> vector<16x64xf32>
    %94 = arith.addf %91, %93 : vector<16x64xf32>
    %cst_45 = arith.constant dense<0.000000e+00> : vector<16x64xf32>
    %95 = tpu.matmul %11, %92, %cst_45 {dimension_numbers = #tpu.dot_dimension_numbers<[1], [0], [0], [1], [0, 0, 1, 1], [], []>} : vector<16x16xf32>, vector<16x64xf32>, vector<16x64xf32> -> vector<16x64xf32>
    %96 = arith.addf %94, %95 : vector<16x64xf32>
    %c5_46 = arith.constant 5 : index
    %c0_47 = arith.constant 0 : index
    %97 = vector.load %arg3[%c5_46, %c0_47] : memref<6x64xf32, #tpu.memory_space<vmem>>, vector<1x64xf32>
    %98 = vector.broadcast %97 : vector<1x64xf32> to vector<16x64xf32>
    %99 = arith.addf %96, %98 : vector<16x64xf32>
    %100 = arith.addf %71, %99 : vector<16x64xf32>
    %c0_48 = arith.constant 0 : index
    %c0_49 = arith.constant 0 : index
    %c0_50 = arith.constant 0 : index
    %101 = vector.load %arg4[%c0_48, %c0_49, %c0_50] : memref<1x16x64xf32, #tpu.memory_space<vmem>>, vector<1x16x64xf32>
    %102 = vector.shape_cast %101 : vector<1x16x64xf32> to vector<16x64xf32>
    %103 = vector.shape_cast %100 : vector<16x64xf32> to vector<1x16x64xf32>
    tpu.vector_store %arg4[%c0_48, %c0_49, %c0_50], %103 {strides = array<i32>} : memref<1x16x64xf32, #tpu.memory_space<vmem>>, vector<1x16x64xf32>,
    return
  }
  func.func @transform_0(%arg0: i32) -> (i32, i32, i32) {
    %c0_i32 = arith.constant 0 : i32
    %c0_i32_0 = arith.constant 0 : i32
    %c0_i32_1 = arith.constant 0 : i32
    return %arg0, %c0_i32, %c0_i32_0 : i32, i32, i32
  }
  func.func @transform_1(%arg0: i32) -> (i32, i32, i32) {
    %c0_i32 = arith.constant 0 : i32
    %c0_i32_0 = arith.constant 0 : i32
    %c0_i32_1 = arith.constant 0 : i32
    %c0_i32_2 = arith.constant 0 : i32
    return %c0_i32, %c0_i32_0, %c0_i32_1 : i32, i32, i32
  }
  func.func @transform_2(%arg0: i32) -> (i32, i32) {
    %c0_i32 = arith.constant 0 : i32
    %c0_i32_0 = arith.constant 0 : i32
    %c0_i32_1 = arith.constant 0 : i32
    return %c0_i32, %c0_i32_0 : i32, i32
  }
  func.func @transform_3(%arg0: i32) -> (i32, i32, i32) {
    %c0_i32 = arith.constant 0 : i32
    %c0_i32_0 = arith.constant 0 : i32
    %c0_i32_1 = arith.constant 0 : i32
    return %arg0, %c0_i32, %c0_i32_0 : i32, i32, i32
  }
}

</mosaic_0001>

<bundles_post_ra>
// kernel: forward.1
= control target key start
LH: loop header
LB: loop body
LE: loop exit
PB: predicated region body
PF: predicated region fallthrough
CT: control target
= control target key end

     0   :  { %8 = vsyncpa [#allocation3], 0  ;;  %s2449_s12 = smov 0   ;;  %s2686_s0 = inlined_call_operand.vmem [shape: f32[2,16,64], index: 0, kind: input, shape index: {}]   ;;  %s2687_s1 = inlined_call_operand.hbm [shape: f32[6,64,192], index: 1, kind: input, shape index: {}]   ;;  %s2688_s2 = inlined_call_operand.vmem [shape: f32[6,64], index: 2, kind: input, shape index: {}]   ;;  %s2689_s3 = inlined_call_operand.vmem [shape: f32[2,16,64], index: 3, kind: output, shape index: {}]  }
   0x1 LB: > { %s2455_s13 = sadd.s32 4294967295, %s2422_s12   ;;  %p2026_p0 = scmp.ge.s32.totalorder %s2422_s12, 1  ;;  %s2422_s12 = sphi %s2449_s12, %s14_s12  }
   0x2   : > { %p113_p1 = scmp.lt.s32.totalorder %s2422_s12, 3  ;;  %s2424_s14 = smov [#allocation2]  }
   0x3   : > { %s125_s15 = sshll.u32 %s2424_s14, 4  ;;  %p2690_p3 = scmp.eq.s32.totalorder %s2455_s13, 0  ;;  %s126_s15 = int_to_ptr.vmem [resolvable:$true] %s125_s15 }
   0x4   : > { %p2459_p2 = pnand %p2026_p0, %p113_p1  ;;  %s2384_s20 = scalar_lea.hbm %s2687_s1, 12288 }
   0x5   : > { %p2385_p6 = scmp.ne.s32.totalorder %s2687_s1, %s2384_s20  ;;  %p2391_p10 = scmp.lt.u32.totalorder %s2384_s20, %s2687_s1 }
   0x6   : > { %s2692_s16 = scalar_select %p2459_p2, 1, 0 }
   0x7   : > { %p2365_p4 = pneg %p2459_p2 }
   0x9   : > { %p2468_p5 = pnand %p2690_p3, %p2365_p4 }
   0xb   : > { %p2386_p7 = pneg %p2468_p5 }
   0xd   : > { %p2387_p8 = pnand %p2386_p7, %p2385_p6 }
   0xf   : > { %p2388_p9 = pneg %p2387_p8 }
  0x11   : > { %p2393_p11 = pnand %p2391_p10, %p2388_p9 }
  0x13   : > { %2396 = shalt.err (!%p2393_p11)
}
  0x14   : > { %s2397_s25 = scalar_lea.vmem %s126_s15, 12288  ;;  %p2405_p1 = scmp.lt.s32.totalorder %s126_s15, %s126_s15 }
  0x15   : > { %p2398_p12 = scmp.ne.s32.totalorder %s126_s15, %s2397_s25  ;;  %p2406_p4 = scmp.lt.s32.totalorder %s2397_s25, %s2397_s25 }
  0x17   : > { %p2400_p13 = pnand %p2398_p12, %p2386_p7  ;;  %p2407_p3 = por %p2406_p4, %p2405_p1 }
  0x19   : > { %p2401_p0 = pneg %p2400_p13 }
  0x1b   : > { %p2408_p2 = pnand %p2407_p3, %p2401_p0 }
  0x1d   : > { %2411 = shalt.err (!%p2408_p2)
}
  0x1e   : > { %s2425_s26 = smov 256   ;;  %s2426_s27 = smov 16  }
  0x1f   : > { %2368 = dma.hbm_to_vmem [thread:$0]  (!%p2468_p5), %s2687_s1, 12288, %s126_s15, [#allocation3], %s2425_s26, %s2425_s26, %s2426_s27  }
  0x20   : > { %p2694_p6 = scmp.ne.s32.totalorder %s2692_s16, 0 }
  0x21   : > { %p2695_p8 = scmp.eq.s32.totalorder (!%p2694_p6), %s2455_s13, 0 }
  0x22   : > { %152 = sbr.rel (%p2694_p6) target bundleno = 4122 (0x101a), region = 32 }
  0x29   : > { %2417 = dma.done.wait (%p2695_p8), [#allocation3], 12288   ;;  %p2696_p7 = pmov %p2695_p8 }
  0x2a   : > { %v2427_v0 = vmov 0.0   ;;  %v209_v1 = vld [vmem:[#allocation2 + $0x8] sm:$0xff]  ;;  %v211_v2 = vld [vmem:[#allocation2 + $0x18] sm:$0xff]  ;;  %v208_v3 = vld [vmem:[#allocation2] sm:$0xff]  ;;  %p176_p2 = scmp.lt.s32.totalorder %s2455_s13, 1  ;;  %vm224_vm0 = vcmask 523264   ;;  %v186_v27 = vlaneseq }
  0x2b   : > { %2419 = vsyncadd (%p2696_p7), [#allocation3], 4294955008  ;;  %295 = vmatprep.mubr.f32.mxu0 %v2427_v0  ;;  %v2217_v4 = vpack.c.bf16 %v211_v2, %v209_v1  ;;  %v210_v5 = vld [vmem:[#allocation2 + $0x10] sm:$0xff]  ;;  %v213_v6 = vld [vmem:[#allocation2 + $0x28] sm:$0xff]  ;;  %vm308_vm2 = vcmask 130048   ;;  %s2428_s7 = smov 64  }
  0x2c   : > { %v215_v7 = vld [vmem:[#allocation2 + $0x38] sm:$0xff]  ;;  %v2219_v8 = vpack.c.bf16 %v210_v5, %v208_v3  ;;  %v212_v10 = vld [vmem:[#allocation2 + $0x20] sm:$0xff]  ;;  %v214_v11 = vld [vmem:[#allocation2 + $0x30] sm:$0xff]  ;;  %s2698_s13 = smov (!%p176_p2, %s2455_s13), 1  ;;  %v190_v28 = vand.u32 127, %v186_v27  ;;  %v187_v29 = vshrl.u32 %v186_v27, 7 }
  0x2d   : > { %v2221_v9 = vpack.c.bf16 %v215_v7, %v213_v6  ;;  %v217_v12 = vld [vmem:[#allocation2 + $0x48] sm:$0xff]  ;;  %2218 = vmatprep.subr.bf16.mxu0 %v2217_v4  ;;  %v219_v13 = vld [vmem:[#allocation2 + $0x58] sm:$0xff]  ;;  %v2223_v14 = vpack.c.bf16 %v214_v11, %v212_v10  ;;  %v216_v16 = vld [vmem:[#allocation2 + $0x40] sm:$0xff]  ;;  %s2083_s30 = sshll.u32 %s2698_s13, 4 }
  0x2e   : > { %2220 = vmatpush1.bf16.msra.mxu0 %v2219_v8  ;;  %v2225_v15 = vpack.c.bf16 %v219_v13, %v217_v12  ;;  %v218_v17 = vld [vmem:[#allocation2 + $0x50] sm:$0xff]  ;;  %v221_v18 = vld [vmem:[#allocation2 + $0x68] sm:$0xff]  ;;  %v223_v19 = vld [vmem:[#allocation2 + $0x78] sm:$0xff]  ;;  %s180_s6 = scalar_lea.vmem %s2686_s0, %s2083_s30  ;;  %v191_v30 = vadd.s32 1, %v190_v28  ;;  %v188_v31 = vadd.s32 8, %v187_v29  ;;  %v198_v33 = vadd.s32 1, %v187_v29  ;;  %s185_s24 = scalar_lea.vmem %s2689_s3, %s2083_s30 }
  0x2f   : > { %2222 = vmatprep.subr.bf16.mxu0 %v2221_v9  ;;  %v2227_v20 = vpack.c.bf16 %v218_v17, %v216_v16  ;;  %v2229_v21 = vpack.c.bf16 %v223_v19, %v221_v18  ;;  %v220_v22 = vld [vmem:[#allocation2 + $0x60] sm:$0xff]  ;;  %v222_v23 = vld [vmem:[#allocation2 + $0x70] sm:$0xff]  ;;  %v2510_v26 = vld [vmem:[%s180_s6 + $0x8] sm:$0xff] }
  0x30   : > { %v2231_v24 = vpack.c.bf16 %v222_v23, %v220_v22  ;;  %v2505_v25 = vld [vmem:[%s180_s6] sm:$0xff]  ;;  %vm192_vm1 = vcmp.eq.s32.totalorder %v187_v29, %v191_v30  ;;  %vm193_vm3 = vcmp.eq.s32.totalorder %v188_v31, %v191_v30  ;;  %v199_v34 = vadd.s32 1, %v188_v31  ;;  %v506_v47 = vld [vmem:[#allocation2 + $0x88] sm:$0xff]  ;;  %v508_v48 = vld [vmem:[#allocation2 + $0x98] sm:$0xff] }
  0x31   : > { %v2515_v32 = vsel %vm192_vm1, 1.0, %v2427_v0  ;;  %vm200_vm4 = vcmp.eq.s32.totalorder %v198_v33, %v190_v28  ;;  %v2525_v41 = vsel %vm193_vm3, 1.0, %v2427_v0  ;;  %v2045_v46 = vld [vmem:[%s2688_s2] ss:$0 sm:$0xff]  ;;  %v2241_v51 = vpack.c.bf16 %v508_v48, %v506_v47  ;;  %v507_v52 = vld [vmem:[#allocation2 + $0x90] sm:$0xff]  ;;  %v510_v53 = vld [vmem:[#allocation2 + $0xa8] sm:$0xff] }
  0x32   : > { %2224 = vmatpush1.bf16.msra.mxu0 %v2223_v14  ;;  %2137 = vmatprep.mubr.msk.f32.mxu1 %vm308_vm2, %v2515_v32  ;;  %vm201_vm5 = vcmp.eq.s32.totalorder %v199_v34, %v190_v28  ;;  %v2528_v42 = vsel %vm200_vm4, 1.0, %v2427_v0  ;;  %v505_v49 = vld [vmem:[#allocation2 + $0x80] sm:$0xff]  ;;  %v512_v54 = vld [vmem:[#allocation2 + $0xb8] sm:$0xff]  ;;  %v511_v59 = vld [vmem:[#allocation2 + $0xb0] sm:$0xff] }
  0x33   : > { %2226 = vmatprep.subr.bf16.mxu0 %v2225_v15  ;;  %v2535_v43 = vsel %vm201_vm5, 1.0, %v2427_v0  ;;  %v2243_v56 = vpack.c.bf16 %v507_v52, %v505_v49  ;;  %v2245_v57 = vpack.c.bf16 %v512_v54, %v510_v53  ;;  %v509_v58 = vld [vmem:[#allocation2 + $0xa0] sm:$0xff]  ;;  %v514_v60 = vld [vmem:[#allocation2 + $0xc8] sm:$0xff]  ;;  %v516_v61 = vld [vmem:[#allocation2 + $0xd8] sm:$0xff] }
  0x34   : > { %v2247_v62 = vpack.c.bf16 %v511_v59, %v509_v58  ;;  %v2249_v63 = vpack.c.bf16 %v516_v61, %v514_v60  ;;  %v513_v1 = vld [vmem:[#allocation2 + $0xc0] sm:$0xff]  ;;  %v515_v2 = vld [vmem:[#allocation2 + $0xd0] sm:$0xff]  ;;  %v518_v3 = vld [vmem:[#allocation2 + $0xe8] sm:$0xff] }
  0x35   : > { %v520_v4 = vld [vmem:[#allocation2 + $0xf8] sm:$0xff]  ;;  %v2251_v5 = vpack.c.bf16 %v515_v2, %v513_v1  ;;  %v517_v7 = vld [vmem:[#allocation2 + $0xe0] sm:$0xff]  ;;  %v519_v8 = vld [vmem:[#allocation2 + $0xf0] sm:$0xff] }
  0x36   : > { %2228 = vmatpush1.bf16.msra.mxu0 %v2227_v20  ;;  %v2253_v6 = vpack.c.bf16 %v520_v4, %v518_v3  ;;  %v2255_v9 = vpack.c.bf16 %v519_v8, %v517_v7  ;;  %v804_v48 = vld [vmem:[#allocation2 + $0x120] sm:$0xff]  ;;  %v806_v49 = vld [vmem:[#allocation2 + $0x130] sm:$0xff]  ;;  %v811_v52 = vld [vmem:[#allocation2 + $0x158] sm:$0xff] }
  0x37   : > { %2230 = vmatprep.subr.bf16.mxu0 %v2229_v21  ;;  %v2271_v54 = vpack.c.bf16 %v806_v49, %v804_v48  ;;  %v813_v59 = vld [vmem:[#allocation2 + $0x168] sm:$0xff]  ;;  %v815_v60 = vld [vmem:[#allocation2 + $0x178] sm:$0xff]  ;;  %v814_v1 = vld [vmem:[#allocation2 + $0x170] sm:$0xff] }
  0x38   : > { %v1091_v48 = vld [vmem:[#allocation2 + $0x1c0] sm:$0xff]  ;;  %v1093_v49 = vld [vmem:[#allocation2 + $0x1d0] sm:$0xff] }
  0x3a   : > { %2232 = vmatpush1.bf16.msra.mxu0 %v2231_v24 }
  0x3d   : > { %2039 = vmatmul.mubr.msk.f32.vlgmr.msra.gmra.mrb[0].mxu0 %vm224_vm0, %v2505_v25 }
  0x3e   : > { %301 = vmatprep.mubr.f32.mxu0 %v2427_v0 }
  0x41   : > { %2040 = vmatmul.mubr.msk.f32.gmra.mrb[2].mxu0 %vm224_vm0, %v2510_v26 }
  0x42   : > { %2151 = vmatprep.mubr.msk.f32.mxu0 %vm308_vm2, %v2515_v32 }
 0x110   : > { %v297_v35 = vpop.f32.mrb[0].mxu0 }
 0x111   : > { %v299_v36 = vpop.f32.mrb[1].mxu0 }
 0x114   : > { %v2521_v37 = vpop.f32.mrb[2].mxu0 }
 0x115   : > { %v305_v38 = vpop.f32.mrb[3].mxu0  ;;  %v2233_v39 = vpack.c.bf16 %v2521_v37, %v297_v35 }
 0x116   : > { %v2237_v40 = vpack.c.bf16 %v305_v38, %v299_v36  ;;  %v801_v36 = vld [vmem:[#allocation2 + $0x108] sm:$0xff]  ;;  %v800_v38 = vld [vmem:[#allocation2 + $0x100] sm:$0xff] }
 0x117   : > { %2234 = vmatprep.subr.bf16.mxu1 %v2233_v39 }
 0x118   : > { %2236 = vmatpush3.bf16.msra.mxu1 %v2233_v39 }
 0x119   : > { %2238 = vmatprep.subr.bf16.mxu1 %v2237_v40 }
 0x11b   : > { %2138 = vmatmul.mubr.msk.f32.vlgmr.msra.gmra.mrb[0].mxu1 %vm308_vm2, %v2525_v41 }
 0x11c   : > { %2240 = vmatpush3.bf16.msra.mxu1 %v2237_v40  ;;  %2144 = vmatprep.mubr.msk.f32.mxu1 %vm308_vm2, %v2528_v42  ;;  %v802_v40 = vld [vmem:[#allocation2 + $0x110] sm:$0xff] }
 0x11d   : > { %2242 = vmatprep.subr.bf16.mxu1 %v2241_v51  ;;  %v809_v51 = vld [vmem:[#allocation2 + $0x148] sm:$0xff] }
 0x11e   : > { %v2273_v58 = vpack.c.bf16 %v811_v52, %v809_v51  ;;  %v1098_v51 = vld [vmem:[#allocation2 + $0x1f8] sm:$0xff]  ;;  %v2299_v52 = vpack.c.bf16 %v1093_v49, %v1091_v48  ;;  %v1392_v48 = vld [vmem:[#allocation2 + $0x270] sm:$0xff] }
 0x11f   : > { %2145 = vmatmul.mubr.msk.f32.vlgmr.msra.gmra.mrb[2].mxu1 %vm308_vm2, %v2535_v43 }
 0x120   : > { %595 = vmatprep.mubr.f32.mxu1 %v2427_v0  ;;  %2244 = vmatpush1.bf16.msra.mxu1 %v2243_v56  ;;  %v810_v56 = vld [vmem:[#allocation2 + $0x150] sm:$0xff] }
 0x121   : > { %2246 = vmatprep.subr.bf16.mxu1 %v2245_v57  ;;  %v2052_v57 = vld [vmem:[%s2688_s2 + $0x1] ss:$0 sm:$0xff] }
 0x124   : > { %2248 = vmatpush1.bf16.msra.mxu1 %v2247_v62  ;;  %v2277_v62 = vpack.c.bf16 %v815_v60, %v813_v59 }
 0x125   : > { %2250 = vmatprep.subr.bf16.mxu1 %v2249_v63  ;;  %v812_v63 = vld [vmem:[#allocation2 + $0x160] sm:$0xff] }
 0x126   : > { %v2279_v2 = vpack.c.bf16 %v814_v1, %v812_v63 }
 0x128   : > { %2252 = vmatpush1.bf16.msra.mxu1 %v2251_v5 }
 0x129   : > { %2254 = vmatprep.subr.bf16.mxu1 %v2253_v6 }
 0x12c   : > { %2256 = vmatpush1.bf16.msra.mxu1 %v2255_v9 }
 0x1ee   : > { %v2139_v44 = vpop.f32.mrb[0].mxu1 }
 0x1ef   : > { %394 = vrot.lane.b32.xlu1 %v2139_v44, %s2428_s7  ;;  %v381_v45 = vpop.f32.mrb[1].mxu1  ;;  %v805_v44 = vld [vmem:[#allocation2 + $0x128] sm:$0xff] }
 0x1f0   : > { %392 = vrot.lane.b32.xlu0 %v381_v45, %s2428_s7  ;;  %v807_v45 = vld [vmem:[#allocation2 + $0x138] sm:$0xff] }
 0x1f1   : > { %v2269_v47 = vpack.c.bf16 %v807_v45, %v805_v44  ;;  %v1094_v44 = vld [vmem:[#allocation2 + $0x1d8] sm:$0xff]  ;;  %v2059_v45 = vld [vmem:[%s2688_s2 + $0x2] ss:$0 sm:$0xff] }
 0x1f2   : > { %v2146_v50 = vpop.f32.mrb[2].mxu1 }
 0x1f3   : > { %v472_v55 = vpop.f32.mrb[3].mxu1  ;;  %497 = vrot.lane.b32.xlu1 %v2045_v46, %s2428_s7  ;;  %v2267_v46 = vpack.c.bf16 %v802_v40, %v800_v38  ;;  %v1087_v38 = vld [vmem:[#allocation2 + $0x1a0] sm:$0xff]  ;;  %v1092_v40 = vld [vmem:[#allocation2 + $0x1c8] sm:$0xff] }
 0x1f4   : > { %483 = vrot.lane.b32.xlu0 %v472_v55, %s2428_s7  ;;  %v808_v55 = vld [vmem:[#allocation2 + $0x140] sm:$0xff] }
 0x1f5   : > { %v2275_v61 = vpack.c.bf16 %v810_v56, %v808_v55  ;;  %v1097_v55 = vld [vmem:[#allocation2 + $0x1f0] sm:$0xff] }
 0x1f8   : > { %485 = vrot.lane.b32.xlu0 %v2146_v50, %s2428_s7 }
 0x261   : > { %v395_v10 = vpop.permute.xlu1 %394 }
 0x262   : > { %v393_v11 = vpop.permute.xlu0 %392  ;;  %v399_v16 = vadd.f32 %v395_v10, %v2521_v37  ;;  %v803_v37 = vld [vmem:[#allocation2 + $0x118] sm:$0xff] }
 0x263   : > { %v398_v12 = vadd.f32 %v393_v11, %v297_v35  ;;  %v2265_v39 = vpack.c.bf16 %v803_v37, %v801_v36 }
 0x265   : > { %v498_v14 = vpop.permute.xlu1 %497  ;;  %2266 = vmatprep.subr.bf16.mxu1 %v2265_v39  ;;  %v1089_v39 = vld [vmem:[#allocation2 + $0x1b0] sm:$0xff] }
 0x266   : > { %v484_v13 = vpop.permute.xlu0 %483 }
 0x267   : > { %v489_v15 = vadd.f32 %v484_v13, %v398_v12 }
 0x269   : > { %v500_v17 = vadd.f32 %v498_v14, %v489_v15 }
 0x26a   : > { %v486_v18 = vpop.permute.xlu0 %485 }
 0x26b   : > { %v502_v19 = vmax.f32 %v500_v17, 0.0  ;;  %v490_v20 = vadd.f32 %v486_v18, %v399_v16 }
 0x26d   : > { %v501_v21 = vadd.f32 %v498_v14, %v490_v20  ;;  %523 = vrot.lane.b32.xlu1 %v502_v19, %s2428_s7 }
 0x26f   : > { %v503_v22 = vmax.f32 %v501_v21, 0.0 }
 0x271   : > { %525 = vrot.lane.b32.xlu0 %v503_v22, %s2428_s7 }
 0x2df   : > { %v524_v23 = vpop.permute.xlu1 %523 }
 0x2e0   : > { %2046 = vmatmul.mubr.msk.f32.vlgmr.msra.gmra.mrb[4].mxu1 %vm224_vm0, %v524_v23 }
 0x2e1   : > { %601 = vmatprep.mubr.f32.mxu1 %v2427_v0  ;;  %2268 = vmatpush1.bf16.msra.mxu1 %v2267_v46  ;;  %v2295_v46 = vpack.c.bf16 %v1089_v39, %v1087_v38  ;;  %v2066_v38 = vld [vmem:[%s2688_s2 + $0x3] ss:$0 sm:$0xff] }
 0x2e2   : > { %2270 = vmatprep.subr.bf16.mxu1 %v2269_v47  ;;  %v2297_v47 = vpack.c.bf16 %v1094_v44, %v1092_v40  ;;  %v1391_v40 = vld [vmem:[#allocation2 + $0x268] sm:$0xff]  ;;  %v1393_v44 = vld [vmem:[#allocation2 + $0x278] sm:$0xff] }
 0x2e3   : > { %v526_v24 = vpop.permute.xlu0 %525 }
 0x2e4   : > { %2047 = vmatmul.mubr.msk.f32.gmra.mrb[6].mxu1 %vm224_vm0, %v526_v24  ;;  %v1084_v24 = vld [vmem:[#allocation2 + $0x188] sm:$0xff] }
 0x2e5   : > { %886 = vmatprep.mubr.f32.mxu1 %v2427_v0  ;;  %2272 = vmatpush1.bf16.msra.mxu1 %v2271_v54  ;;  %v1095_v54 = vld [vmem:[#allocation2 + $0x1e0] sm:$0xff] }
 0x2e6   : > { %2274 = vmatprep.subr.bf16.mxu1 %v2273_v58  ;;  %v2303_v56 = vpack.c.bf16 %v1097_v55, %v1095_v54 }
 0x2e9   : > { %2276 = vmatpush1.bf16.msra.mxu1 %v2275_v61 }
 0x2ea   : > { %2278 = vmatprep.subr.bf16.mxu1 %v2277_v62 }
 0x2ed   : > { %2280 = vmatpush1.bf16.msra.mxu1 %v2279_v2 }
 0x3b3   : > { %v597_v27 = vpop.f32.mrb[4].mxu1 }
 0x3b4   : > { %v599_v28 = vpop.f32.mrb[5].mxu1 }
 0x3b7   : > { %v603_v29 = vpop.f32.mrb[6].mxu1 }
 0x3b8   : > { %v2257_v30 = vpack.c.bf16 %v603_v29, %v597_v27  ;;  %v605_v31 = vpop.f32.mrb[7].mxu1 }
 0x3b9   : > { %v2261_v33 = vpack.c.bf16 %v605_v31, %v599_v28  ;;  %v1083_v28 = vld [vmem:[#allocation2 + $0x180] sm:$0xff]  ;;  %v1085_v31 = vld [vmem:[#allocation2 + $0x190] sm:$0xff] }
 0x3ba   : > { %2258 = vmatprep.subr.bf16.mxu0 %v2257_v30  ;;  %v2291_v36 = vpack.c.bf16 %v1085_v31, %v1083_v28  ;;  %v1382_v28 = vld [vmem:[#allocation2 + $0x220] sm:$0xff]  ;;  %v1387_v31 = vld [vmem:[#allocation2 + $0x248] sm:$0xff] }
 0x3bb   : > { %2260 = vmatpush3.bf16.msra.mxu0 %v2257_v30 }
 0x3bc   : > { %2262 = vmatprep.subr.bf16.mxu0 %v2261_v33 }
 0x3be   : > { %2152 = vmatmul.mubr.msk.f32.vlgmr.msra.gmra.mrb[4].mxu0 %vm308_vm2, %v2525_v41 }
 0x3bf   : > { %2264 = vmatpush3.bf16.msra.mxu0 %v2261_v33  ;;  %2158 = vmatprep.mubr.msk.f32.mxu0 %vm308_vm2, %v2528_v42  ;;  %v1088_v33 = vld [vmem:[#allocation2 + $0x1a8] sm:$0xff] }
 0x3c2   : > { %2159 = vmatmul.mubr.msk.f32.vlgmr.msra.gmra.mrb[6].mxu0 %vm308_vm2, %v2535_v43 }
 0x3c3   : > { %2165 = vmatprep.mubr.msk.f32.mxu0 %vm308_vm2, %v2515_v32 }
 0x491   : > { %v2153_v34 = vpop.f32.mrb[4].mxu0 }
 0x492   : > { %v674_v35 = vpop.f32.mrb[5].mxu0 }
 0x493   : > { %685 = vrot.lane.b32.xlu1 %v674_v35, %s2428_s7 }
 0x495   : > { %v2160_v50 = vpop.f32.mrb[6].mxu0 }
 0x496   : > { %v759_v53 = vpop.f32.mrb[7].mxu0 }
 0x497   : > { %687 = vrot.lane.b32.xlu1 %v2153_v34, %s2428_s7  ;;  %770 = vrot.lane.b32.xlu0 %v759_v53, %s2428_s7  ;;  %v1090_v34 = vld [vmem:[#allocation2 + $0x1b8] sm:$0xff] }
 0x498   : > { %v2293_v37 = vpack.c.bf16 %v1090_v34, %v1088_v33  ;;  %v1389_v33 = vld [vmem:[#allocation2 + $0x258] sm:$0xff] }
 0x499   : > { %v2321_v39 = vpack.c.bf16 %v1389_v33, %v1387_v31 }
 0x49b   : > { %772 = vrot.lane.b32.xlu1 %v2160_v50, %s2428_s7  ;;  %784 = vrot.lane.b32.xlu0 %v2052_v57, %s2428_s7  ;;  %v1096_v50 = vld [vmem:[#allocation2 + $0x1e8] sm:$0xff] }
 0x49c   : > { %v2301_v53 = vpack.c.bf16 %v1098_v51, %v1096_v50 }
 0x505   : > { %v686_v3 = vpop.permute.xlu1 %685 }
 0x506   : > { %v691_v6 = vadd.f32 %v686_v3, %v597_v27  ;;  %v1086_v27 = vld [vmem:[#allocation2 + $0x198] sm:$0xff] }
 0x507   : > { %v2289_v30 = vpack.c.bf16 %v1086_v27, %v1084_v24 }
 0x509   : > { %v688_v4 = vpop.permute.xlu1 %687  ;;  %v771_v5 = vpop.permute.xlu0 %770 }
 0x50a   : > { %v692_v7 = vadd.f32 %v688_v4, %v603_v29  ;;  %v776_v8 = vadd.f32 %v771_v5, %v691_v6 }
 0x50d   : > { %v773_v9 = vpop.permute.xlu1 %772  ;;  %v785_v10 = vpop.permute.xlu0 %784 }
 0x50e   : > { %v777_v11 = vadd.f32 %v773_v9, %v692_v7  ;;  %v787_v12 = vadd.f32 %v785_v10, %v776_v8 }
 0x510   : > { %v788_v13 = vadd.f32 %v785_v10, %v777_v11  ;;  %791 = vrot.lane.b32.xlu0 %v787_v12, %s2428_s7 }
 0x512   : > { %793 = vrot.lane.b32.xlu1 %v788_v13, %s2428_s7 }
 0x582   : > { %v792_v14 = vpop.permute.xlu0 %791 }
 0x583   : > { %v2574_v15 = vadd.f32 %v792_v14, %v2505_v25 }
 0x584   : > { %v794_v16 = vpop.permute.xlu1 %793 }
 0x585   : > { %2053 = vmatmul.mubr.msk.f32.vlgmr.msra.gmra.mrb[8].mxu1 %vm224_vm0, %v2574_v15  ;;  %v2580_v17 = vadd.f32 %v794_v16, %v2510_v26 }
 0x586   : > { %892 = vmatprep.mubr.f32.mxu1 %v2427_v0 }
 0x589   : > { %2054 = vmatmul.mubr.msk.f32.gmra.mrb[10].mxu1 %vm224_vm0, %v2580_v17 }
 0x58a   : > { %2179 = vmatprep.mubr.msk.f32.mxu1 %vm308_vm2, %v2515_v32 }
 0x658   : > { %v888_v18 = vpop.f32.mrb[8].mxu1 }
 0x659   : > { %v890_v19 = vpop.f32.mrb[9].mxu1 }
 0x65c   : > { %v894_v20 = vpop.f32.mrb[10].mxu1 }
 0x65d   : > { %v2281_v25 = vpack.c.bf16 %v894_v20, %v888_v18  ;;  %v896_v21 = vpop.f32.mrb[11].mxu1 }
 0x65e   : > { %v2285_v22 = vpack.c.bf16 %v896_v21, %v890_v19  ;;  %v1379_v19 = vld [vmem:[#allocation2 + $0x208] sm:$0xff] }
 0x65f   : > { %2282 = vmatprep.subr.bf16.mxu0 %v2281_v25 }
 0x660   : > { %2284 = vmatpush3.bf16.msra.mxu0 %v2281_v25  ;;  %v1378_v25 = vld [vmem:[#allocation2 + $0x200] sm:$0xff] }
 0x661   : > { %2286 = vmatprep.subr.bf16.mxu0 %v2285_v22 }
 0x663   : > { %2166 = vmatmul.mubr.msk.f32.vlgmr.msra.gmra.mrb[8].mxu0 %vm308_vm2, %v2525_v41 }
 0x664   : > { %2288 = vmatpush3.bf16.msra.mxu0 %v2285_v22  ;;  %2172 = vmatprep.mubr.msk.f32.mxu0 %vm308_vm2, %v2528_v42  ;;  %v1380_v22 = vld [vmem:[#allocation2 + $0x210] sm:$0xff] }
 0x665   : > { %2290 = vmatprep.subr.bf16.mxu0 %v2289_v30  ;;  %v2315_v24 = vpack.c.bf16 %v1380_v22, %v1378_v25  ;;  %v1667_v25 = vld [vmem:[#allocation2 + $0x2b0] sm:$0xff]  ;;  %v1672_v22 = vld [vmem:[#allocation2 + $0x2d8] sm:$0xff] }
 0x667   : > { %2173 = vmatmul.mubr.msk.f32.vlgmr.msra.gmra.mrb[10].mxu0 %vm308_vm2, %v2535_v43 }
 0x668   : > { %1173 = vmatprep.mubr.f32.mxu0 %v2427_v0  ;;  %2292 = vmatpush1.bf16.msra.mxu0 %v2291_v36  ;;  %v1386_v36 = vld [vmem:[#allocation2 + $0x240] sm:$0xff] }
 0x669   : > { %2294 = vmatprep.subr.bf16.mxu0 %v2293_v37  ;;  %v1388_v37 = vld [vmem:[#allocation2 + $0x250] sm:$0xff] }
 0x66c   : > { %2296 = vmatpush1.bf16.msra.mxu0 %v2295_v46  ;;  %v2325_v46 = vpack.c.bf16 %v1393_v44, %v1391_v40 }
 0x66d   : > { %2298 = vmatprep.subr.bf16.mxu0 %v2297_v47  ;;  %v1390_v47 = vld [vmem:[#allocation2 + $0x260] sm:$0xff] }
 0x66e   : > { %v2327_v49 = vpack.c.bf16 %v1392_v48, %v1390_v47 }
 0x670   : > { %2300 = vmatpush1.bf16.msra.mxu0 %v2299_v52 }
 0x671   : > { %2302 = vmatprep.subr.bf16.mxu0 %v2301_v53 }
 0x674   : > { %2304 = vmatpush1.bf16.msra.mxu0 %v2303_v56 }
 0x736   : > { %v2167_v26 = vpop.f32.mrb[8].mxu0 }
 0x737   : > { %v965_v23 = vpop.f32.mrb[9].mxu0 }
 0x738   : > { %976 = vrot.lane.b32.xlu0 %v965_v23, %s2428_s7  ;;  %v1385_v23 = vld [vmem:[#allocation2 + $0x238] sm:$0xff] }
 0x73a   : > { %v2174_v29 = vpop.f32.mrb[10].mxu0 }
 0x73b   : > { %v1050_v35 = vpop.f32.mrb[11].mxu0 }
 0x73c   : > { %978 = vrot.lane.b32.xlu0 %v2167_v26, %s2428_s7  ;;  %1061 = vrot.lane.b32.xlu1 %v1050_v35, %s2428_s7  ;;  %v1383_v26 = vld [vmem:[#allocation2 + $0x228] sm:$0xff] }
 0x73d   : > { %v2317_v27 = vpack.c.bf16 %v1385_v23, %v1383_v26  ;;  %v2073_v26 = vld [vmem:[%s2688_s2 + $0x4] ss:$0 sm:$0xff] }
 0x740   : > { %1063 = vrot.lane.b32.xlu0 %v2174_v29, %s2428_s7  ;;  %1075 = vrot.lane.b32.xlu1 %v2059_v45, %s2428_s7  ;;  %v1384_v29 = vld [vmem:[#allocation2 + $0x230] sm:$0xff]  ;;  %v2323_v45 = vpack.c.bf16 %v1388_v37, %v1386_v36 }
 0x741   : > { %v2319_v35 = vpack.c.bf16 %v1384_v29, %v1382_v28  ;;  %v1671_v28 = vld [vmem:[#allocation2 + $0x2d0] sm:$0xff]  ;;  %v1674_v29 = vld [vmem:[#allocation2 + $0x2e8] sm:$0xff] }
 0x7aa   : > { %v977_v57 = vpop.permute.xlu0 %976 }
 0x7ab   : > { %v982_v60 = vadd.f32 %v977_v57, %v888_v18 }
 0x7ae   : > { %v979_v58 = vpop.permute.xlu0 %978  ;;  %v1062_v59 = vpop.permute.xlu1 %1061 }
 0x7af   : > { %v983_v61 = vadd.f32 %v979_v58, %v894_v20  ;;  %v1067_v62 = vadd.f32 %v1062_v59, %v982_v60  ;;  %v1381_v20 = vld [vmem:[#allocation2 + $0x218] sm:$0xff] }
 0x7b0   : > { %v2313_v21 = vpack.c.bf16 %v1381_v20, %v1379_v19  ;;  %v1665_v20 = vld [vmem:[#allocation2 + $0x2a0] sm:$0xff] }
 0x7b1   : > { %v2343_v23 = vpack.c.bf16 %v1667_v25, %v1665_v20 }
 0x7b2   : > { %v1064_v63 = vpop.permute.xlu0 %1063  ;;  %v1076_v1 = vpop.permute.xlu1 %1075  ;;  %2314 = vmatprep.subr.bf16.mxu0 %v2313_v21  ;;  %v1670_v21 = vld [vmem:[#allocation2 + $0x2c8] sm:$0xff] }
 0x7b3   : > { %v1068_v2 = vadd.f32 %v1064_v63, %v983_v61  ;;  %v1078_v3 = vadd.f32 %v1076_v1, %v1067_v62 }
 0x7b5   : > { %v1079_v4 = vadd.f32 %v1076_v1, %v1068_v2  ;;  %v1080_v5 = vmax.f32 %v1078_v3, 0.0 }
 0x7b7   : > { %v1081_v6 = vmax.f32 %v1079_v4, 0.0  ;;  %1101 = vrot.lane.b32.xlu1 %v1080_v5, %s2428_s7 }
 0x7b9   : > { %1103 = vrot.lane.b32.xlu0 %v1081_v6, %s2428_s7 }
 0x829   : > { %v1102_v7 = vpop.permute.xlu1 %1101 }
 0x82a   : > { %2060 = vmatmul.mubr.msk.f32.vlgmr.msra.gmra.mrb[12].mxu0 %vm224_vm0, %v1102_v7  ;;  %v1662_v7 = vld [vmem:[#allocation2 + $0x288] sm:$0xff] }
 0x82b   : > { %1179 = vmatprep.mubr.f32.mxu0 %v2427_v0  ;;  %v1104_v8 = vpop.permute.xlu0 %1103  ;;  %2316 = vmatpush1.bf16.msra.mxu0 %v2315_v24  ;;  %v2345_v24 = vpack.c.bf16 %v1672_v22, %v1670_v21 }
 0x82c   : > { %2318 = vmatprep.subr.bf16.mxu0 %v2317_v27  ;;  %v1669_v27 = vld [vmem:[#allocation2 + $0x2c0] sm:$0xff] }
 0x82d   : > { %v2347_v31 = vpack.c.bf16 %v1671_v28, %v1669_v27 }
 0x82e   : > { %2061 = vmatmul.mubr.msk.f32.gmra.mrb[14].mxu0 %vm224_vm0, %v1104_v8  ;;  %v1664_v8 = vld [vmem:[#allocation2 + $0x298] sm:$0xff] }
 0x82f   : > { %1464 = vmatprep.mubr.f32.mxu0 %v2427_v0  ;;  %2320 = vmatpush1.bf16.msra.mxu0 %v2319_v35  ;;  %v1675_v35 = vld [vmem:[#allocation2 + $0x2f0] sm:$0xff] }
 0x830   : > { %2322 = vmatprep.subr.bf16.mxu0 %v2321_v39 }
 0x833   : > { %2324 = vmatpush1.bf16.msra.mxu0 %v2323_v45 }
 0x834   : > { %2326 = vmatprep.subr.bf16.mxu0 %v2325_v46 }
 0x837   : > { %2328 = vmatpush1.bf16.msra.mxu0 %v2327_v49 }
 0x8fd   : > { %v1175_v9 = vpop.f32.mrb[12].mxu0 }
 0x8fe   : > { %v1177_v10 = vpop.f32.mrb[13].mxu0 }
 0x901   : > { %v1181_v11 = vpop.f32.mrb[14].mxu0 }
 0x902   : > { %v2305_v12 = vpack.c.bf16 %v1181_v11, %v1175_v9  ;;  %v1183_v13 = vpop.f32.mrb[15].mxu0 }
 0x903   : > { %v2309_v14 = vpack.c.bf16 %v1183_v13, %v1177_v10  ;;  %v1666_v13 = vld [vmem:[#allocation2 + $0x2a8] sm:$0xff] }
 0x904   : > { %2306 = vmatprep.subr.bf16.mxu1 %v2305_v12 }
 0x905   : > { %2308 = vmatpush3.bf16.msra.mxu1 %v2305_v12  ;;  %v1663_v12 = vld [vmem:[#allocation2 + $0x290] sm:$0xff] }
 0x906   : > { %2310 = vmatprep.subr.bf16.mxu1 %v2309_v14 }
 0x908   : > { %2180 = vmatmul.mubr.msk.f32.vlgmr.msra.gmra.mrb[12].mxu1 %vm308_vm2, %v2525_v41 }
 0x909   : > { %2312 = vmatpush3.bf16.msra.mxu1 %v2309_v14  ;;  %2186 = vmatprep.mubr.msk.f32.mxu1 %vm308_vm2, %v2528_v42  ;;  %v1668_v14 = vld [vmem:[#allocation2 + $0x2b8] sm:$0xff] }
 0x90a   : > { %v2341_v19 = vpack.c.bf16 %v1668_v14, %v1666_v13 }
 0x90c   : > { %2187 = vmatmul.mubr.msk.f32.vlgmr.msra.gmra.mrb[14].mxu1 %vm308_vm2, %v2535_v43 }
 0x90d   : > { %2193 = vmatprep.mubr.msk.f32.mxu1 %vm308_vm2, %v2515_v32 }
 0x9db   : > { %v2181_v16 = vpop.f32.mrb[12].mxu1 }
 0x9dc   : > { %v1252_v18 = vpop.f32.mrb[13].mxu1 }
 0x9dd   : > { %1263 = vrot.lane.b32.xlu1 %v1252_v18, %s2428_s7 }
 0x9df   : > { %v2188_v30 = vpop.f32.mrb[14].mxu1 }
 0x9e0   : > { %v1337_v34 = vpop.f32.mrb[15].mxu1 }
 0x9e1   : > { %1265 = vrot.lane.b32.xlu1 %v2181_v16, %s2428_s7  ;;  %1348 = vrot.lane.b32.xlu0 %v1337_v34, %s2428_s7  ;;  %v1673_v34 = vld [vmem:[#allocation2 + $0x2e0] sm:$0xff] }
 0x9e2   : > { %v2351_v36 = vpack.c.bf16 %v1675_v35, %v1673_v34 }
 0x9e5   : > { %1350 = vrot.lane.b32.xlu1 %v2188_v30, %s2428_s7  ;;  %1362 = vrot.lane.b32.xlu0 %v2066_v38, %s2428_s7  ;;  %v1676_v30 = vld [vmem:[#allocation2 + $0x2f8] sm:$0xff] }
 0x9e6   : > { %v2349_v33 = vpack.c.bf16 %v1676_v30, %v1674_v29 }
 0xa4f   : > { %v1264_v50 = vpop.permute.xlu1 %1263 }
 0xa50   : > { %v1269_v53 = vadd.f32 %v1264_v50, %v1175_v9  ;;  %v1661_v9 = vld [vmem:[#allocation2 + $0x280] sm:$0xff] }
 0xa51   : > { %v2339_v18 = vpack.c.bf16 %v1663_v12, %v1661_v9 }
 0xa53   : > { %v1266_v51 = vpop.permute.xlu1 %1265  ;;  %v1349_v52 = vpop.permute.xlu0 %1348 }
 0xa54   : > { %v1270_v54 = vadd.f32 %v1266_v51, %v1181_v11  ;;  %v1354_v55 = vadd.f32 %v1349_v52, %v1269_v53  ;;  %v2337_v11 = vpack.c.bf16 %v1664_v8, %v1662_v7 }
 0xa57   : > { %v1351_v56 = vpop.permute.xlu1 %1350  ;;  %v1363_v57 = vpop.permute.xlu0 %1362 }
 0xa58   : > { %v1355_v58 = vadd.f32 %v1351_v56, %v1270_v54  ;;  %v1365_v59 = vadd.f32 %v1363_v57, %v1354_v55 }
 0xa5a   : > { %v1366_v60 = vadd.f32 %v1363_v57, %v1355_v58  ;;  %1369 = vrot.lane.b32.xlu0 %v1365_v59, %s2428_s7 }
 0xa5c   : > { %1371 = vrot.lane.b32.xlu1 %v1366_v60, %s2428_s7 }
 0xacc   : > { %v1370_v61 = vpop.permute.xlu0 %1369 }
 0xacd   : > { %v2626_v62 = vadd.f32 %v1370_v61, %v2574_v15 }
 0xace   : > { %v1372_v63 = vpop.permute.xlu1 %1371 }
 0xacf   : > { %2067 = vmatmul.mubr.msk.f32.vlgmr.msra.gmra.mrb[16].mxu0 %vm224_vm0, %v2626_v62  ;;  %v2632_v1 = vadd.f32 %v1372_v63, %v2580_v17 }
 0xad0   : > { %1470 = vmatprep.mubr.f32.mxu0 %v2427_v0 }
 0xad3   : > { %2068 = vmatmul.mubr.msk.f32.gmra.mrb[18].mxu0 %vm224_vm0, %v2632_v1 }
 0xad4   : > { %2207 = vmatprep.mubr.msk.f32.mxu0 %vm308_vm2, %v2515_v32 }
 0xba2   : > { %v1466_v2 = vpop.f32.mrb[16].mxu0 }
 0xba3   : > { %v1468_v3 = vpop.f32.mrb[17].mxu0 }
 0xba6   : > { %v1472_v4 = vpop.f32.mrb[18].mxu0 }
 0xba7   : > { %v2329_v15 = vpack.c.bf16 %v1472_v4, %v1466_v2  ;;  %v1474_v5 = vpop.f32.mrb[19].mxu0 }
 0xba8   : > { %v2333_v6 = vpack.c.bf16 %v1474_v5, %v1468_v3 }
 0xba9   : > { %2330 = vmatprep.subr.bf16.mxu1 %v2329_v15 }
 0xbaa   : > { %2332 = vmatpush3.bf16.msra.mxu1 %v2329_v15 }
 0xbab   : > { %2334 = vmatprep.subr.bf16.mxu1 %v2333_v6 }
 0xbad   : > { %2194 = vmatmul.mubr.msk.f32.vlgmr.msra.gmra.mrb[16].mxu1 %vm308_vm2, %v2525_v41 }
 0xbae   : > { %2336 = vmatpush3.bf16.msra.mxu1 %v2333_v6  ;;  %2200 = vmatprep.mubr.msk.f32.mxu1 %vm308_vm2, %v2528_v42 }
 0xbaf   : > { %2338 = vmatprep.subr.bf16.mxu1 %v2337_v11 }
 0xbb1   : > { %2201 = vmatmul.mubr.msk.f32.vlgmr.msra.gmra.mrb[18].mxu1 %vm308_vm2, %v2535_v43 }
 0xbb2   : > { %1751 = vmatprep.mubr.f32.mxu1 %v2427_v0  ;;  %2340 = vmatpush1.bf16.msra.mxu1 %v2339_v18 }
 0xbb3   : > { %2342 = vmatprep.subr.bf16.mxu1 %v2341_v19 }
 0xbb6   : > { %2344 = vmatpush1.bf16.msra.mxu1 %v2343_v23 }
 0xbb7   : > { %2346 = vmatprep.subr.bf16.mxu1 %v2345_v24 }
 0xbba   : > { %2348 = vmatpush1.bf16.msra.mxu1 %v2347_v31 }
 0xbbb   : > { %2350 = vmatprep.subr.bf16.mxu1 %v2349_v33 }
 0xbbe   : > { %2352 = vmatpush1.bf16.msra.mxu1 %v2351_v36 }
 0xc80   : > { %v2195_v32 = vpop.f32.mrb[16].mxu1 }
 0xc81   : > { %v1543_v17 = vpop.f32.mrb[17].mxu1 }
 0xc82   : > { %1554 = vrot.lane.b32.xlu0 %v1543_v17, %s2428_s7 }
 0xc84   : > { %v2202_v10 = vpop.f32.mrb[18].mxu1 }
 0xc85   : > { %v1628_v16 = vpop.f32.mrb[19].mxu1 }
 0xc86   : > { %1556 = vrot.lane.b32.xlu0 %v2195_v32, %s2428_s7  ;;  %1639 = vrot.lane.b32.xlu1 %v1628_v16, %s2428_s7 }
 0xc8a   : > { %1641 = vrot.lane.b32.xlu0 %v2202_v10, %s2428_s7  ;;  %1653 = vrot.lane.b32.xlu1 %v2073_v26, %s2428_s7 }
 0xcf4   : > { %v1555_v37 = vpop.permute.xlu0 %1554 }
 0xcf5   : > { %v1560_v40 = vadd.f32 %v1555_v37, %v1466_v2 }
 0xcf8   : > { %v1557_v38 = vpop.permute.xlu0 %1556  ;;  %v1640_v39 = vpop.permute.xlu1 %1639 }
 0xcf9   : > { %v1561_v44 = vadd.f32 %v1557_v38, %v1472_v4  ;;  %v1645_v45 = vadd.f32 %v1640_v39, %v1560_v40 }
 0xcfc   : > { %v1642_v46 = vpop.permute.xlu0 %1641  ;;  %v1654_v47 = vpop.permute.xlu1 %1653 }
 0xcfd   : > { %v1646_v48 = vadd.f32 %v1642_v46, %v1561_v44  ;;  %v1656_v49 = vadd.f32 %v1654_v47, %v1645_v45 }
 0xcff   : > { %v1657_v50 = vadd.f32 %v1654_v47, %v1646_v48  ;;  %v1658_v51 = vmax.f32 %v1656_v49, 0.0 }
 0xd01   : > { %v1659_v52 = vmax.f32 %v1657_v50, 0.0  ;;  %1679 = vrot.lane.b32.xlu1 %v1658_v51, %s2428_s7 }
 0xd03   : > { %1681 = vrot.lane.b32.xlu0 %v1659_v52, %s2428_s7 }
 0xd73   : > { %v1680_v53 = vpop.permute.xlu1 %1679 }
 0xd74   : > { %2074 = vmatmul.mubr.msk.f32.vlgmr.msra.gmra.mrb[20].mxu1 %vm224_vm0, %v1680_v53 }
 0xd75   : > { %1757 = vmatprep.mubr.f32.mxu1 %v2427_v0  ;;  %v1682_v54 = vpop.permute.xlu0 %1681 }
 0xd78   : > { %2075 = vmatmul.mubr.msk.f32.gmra.mrb[22].mxu1 %vm224_vm0, %v1682_v54 }
 0xe47   : > { %v1753_v55 = vpop.f32.mrb[20].mxu1 }
 0xe48   : > { %v1755_v56 = vpop.f32.mrb[21].mxu1 }
 0xe4b   : > { %v1759_v57 = vpop.f32.mrb[22].mxu1 }
 0xe4c   : > { %v2353_v58 = vpack.c.bf16 %v1759_v57, %v1753_v55  ;;  %v1761_v59 = vpop.f32.mrb[23].mxu1 }
 0xe4d   : > { %v2357_v60 = vpack.c.bf16 %v1761_v59, %v1755_v56 }
 0xe4e   : > { %2354 = vmatprep.subr.bf16.mxu0 %v2353_v58 }
 0xe4f   : > { %2356 = vmatpush3.bf16.msra.mxu0 %v2353_v58 }
 0xe50   : > { %2358 = vmatprep.subr.bf16.mxu0 %v2357_v60 }
 0xe52   : > { %2208 = vmatmul.mubr.msk.f32.vlgmr.msra.gmra.mrb[20].mxu0 %vm308_vm2, %v2525_v41  ;;  %v2080_v41 = vld [vmem:[%s2688_s2 + $0x5] ss:$0 sm:$0xff] }
 0xe53   : > { %2360 = vmatpush3.bf16.msra.mxu0 %v2357_v60  ;;  %2214 = vmatprep.mubr.msk.f32.mxu0 %vm308_vm2, %v2528_v42 }
 0xe56   : > { %2215 = vmatmul.mubr.msk.f32.vlgmr.msra.gmra.mrb[22].mxu0 %vm308_vm2, %v2535_v43 }
 0xf25   : > { %v2209_v0 = vpop.f32.mrb[20].mxu0 }
 0xf26   : > { %1843 = vrot.lane.b32.xlu0 %v2209_v0, %s2428_s7  ;;  %v1830_v61 = vpop.f32.mrb[21].mxu0 }
 0xf27   : > { %1841 = vrot.lane.b32.xlu1 %v1830_v61, %s2428_s7 }
 0xf29   : > { %v2216_v63 = vpop.f32.mrb[22].mxu0 }
 0xf2a   : > { %1928 = vrot.lane.b32.xlu0 %v2216_v63, %s2428_s7  ;;  %v1915_v2 = vpop.f32.mrb[23].mxu0 }
 0xf2b   : > { %1926 = vrot.lane.b32.xlu1 %v1915_v2, %s2428_s7 }
 0xf2f   : > { %1940 = vrot.lane.b32.xlu1 %v2080_v41, %s2428_s7 }
 0xf98   : > { %v1844_v42 = vpop.permute.xlu0 %1843 }
 0xf99   : > { %v1842_v43 = vpop.permute.xlu1 %1841  ;;  %v1848_v15 = vadd.f32 %v1844_v42, %v1759_v57 }
 0xf9a   : > { %v1847_v5 = vadd.f32 %v1842_v43, %v1753_v55 }
 0xf9c   : > { %v1929_v3 = vpop.permute.xlu0 %1928 }
 0xf9d   : > { %v1927_v4 = vpop.permute.xlu1 %1926  ;;  %v1933_v6 = vadd.f32 %v1929_v3, %v1848_v15 }
 0xf9e   : > { %v1932_v32 = vadd.f32 %v1927_v4, %v1847_v5 }
 0xfa1   : > { %v1941_v17 = vpop.permute.xlu1 %1940 }
 0xfa2   : > { %v1943_v7 = vadd.f32 %v1941_v17, %v1932_v32  ;;  %v1944_v8 = vadd.f32 %v1941_v17, %v1933_v6 }
 0xfa4   : > { %1949 = vrot.lane.b32.xlu1 %v1944_v8, %s2428_s7  ;;  %1947 = vrot.lane.b32.xlu0 %v1943_v7, %s2428_s7 }
0x1016   : > { %v1950_v9 = vpop.permute.xlu1 %1949  ;;  %v1948_v10 = vpop.permute.xlu0 %1947 }
0x1017   : > { %v1954_v11 = vadd.f32 %v1950_v9, %v2632_v1  ;;  %v1953_v12 = vadd.f32 %v1948_v10, %v2626_v62 }
0x1019   : > { %1956 = vst.msk [vmem:[%s185_s24 + $0x8] sm:$0xff] %vm224_vm0, %v1954_v11  ;;  %1955 = vst.msk [vmem:[%s185_s24] sm:$0xff] %vm224_vm0, %v1953_v12 }
0x101a PF: > { %s14_s12 = sadd.s32 1, %s2422_s12  }
0x101b   : > { %p11_p3 = scmp.ge.s32.totalorder %s14_s12, 4  }
0x101d   :  { %13 = sbr.rel (!%p11_p3) target bundleno = 1 (0x1), region = 72 }
0x1024   :  { %1978 = vsyncpa [#allocation3], 1 }
0x1025   :  { %1980 = vsyncpa [#allocation3 + $0x1], 1 }

</bundles_post_ra>
